<compile_context>
chip_gen: v7x
topology: tpu7x:2x2x1
jax: 0.10.0
libtpu: 0.0.40
codegen_flags: <defaults>
</compile_context>

<pallas_src>
import jax
import jax.numpy as jnp
from jax.experimental import pallas as pl
from jax.experimental.pallas import tpu as pltpu

IN_DIM = 28 * 28   # 784
H1 = 128
H2 = 64
OUT = 10
H2_PAD = 128       # 64  -> 128 lanes
OUT_PAD = 128      # 10  -> 128 lanes


def mlp_kernel(x_ref, w1_ref, b1_ref, w2_ref, b2_ref, w3_ref, b3_ref, o_ref):
    # x_ref : (BT, 784)  f32   (streamed from HBM; cast to bf16 in-kernel)
    # w1_ref: (784, 128) bf16   b1_ref: (1, 128) f32
    # w2_ref: (128, 128) bf16   b2_ref: (1, 128) f32   (zero-padded from (128, 64))
    # w3_ref: (128, 128) bf16   b3_ref: (1, 128) f32   (zero-padded from (64, 10))
    # o_ref : (BT, 128)  bf16  (cols 10..127 are exactly zero; sliced off outside)
    x = x_ref[...].astype(jnp.bfloat16)            # VPU cast, hidden under DMA

    h1 = jnp.dot(x, w1_ref[...], preferred_element_type=jnp.float32) + b1_ref[...]
    h1 = jnp.maximum(h1, 0.0)                      # ReLU in f32 (v5e-safe)

    h2 = jnp.dot(h1.astype(jnp.bfloat16), w2_ref[...],
                 preferred_element_type=jnp.float32) + b2_ref[...]
    h2 = jnp.maximum(h2, 0.0)                      # ReLU in f32

    logits = jnp.dot(h2.astype(jnp.bfloat16), w3_ref[...],
                     preferred_element_type=jnp.float32) + b3_ref[...]
    o_ref[...] = logits.astype(jnp.bfloat16)       # lane-dense (BT, 128) bf16 store


def _round_up(n, m):
    return ((n + m - 1) // m) * m


def prepare_params(params):
    """Cast weights to bf16 and zero-pad the small GEMM dims to 128 lanes."""
    w1, b1, w2, b2, w3, b3 = params
    w1p = w1.astype(jnp.bfloat16)                                           # (784, 128)
    w2p = jnp.pad(w2, ((0, 0), (0, H2_PAD - H2))).astype(jnp.bfloat16)      # (128, 128)
    w3p = jnp.pad(w3, ((0, H2_PAD - H2), (0, OUT_PAD - OUT))).astype(jnp.bfloat16)  # (128,128)
    b1p = b1.astype(jnp.float32)                                            # (1, 128)
    b2p = jnp.pad(b2, ((0, 0), (0, H2_PAD - H2))).astype(jnp.float32)       # (1, 128)
    # b3 MUST be zero-padded so output cols 10..127 stay exactly zero.
    b3p = jnp.pad(b3, ((0, 0), (0, OUT_PAD - OUT))).astype(jnp.float32)     # (1, 128)
    return w1p, b1p, w2p, b2p, w3p, b3p


def net_forward(x_nchw, params, *, block_b=2048):
    """Forward pass of Net. x_nchw: (B, 1, 28, 28) float32 -> (B, 10) float32."""
    w1p, b1p, w2p, b2p, w3p, b3p = prepare_params(params)

    B = x_nchw.shape[0]
    # Same as torch .view(-1, 784); stays f32 — the bf16 cast happens in-kernel.
    x = x_nchw.reshape(B, IN_DIM)

    # Batch tile: multiple of 16 (clean bf16 sublane packing), capped so the grid
    # has >=2 steps whenever B allows (v7x megacore + DMA/compute overlap).
    block_b = max(16, _round_up(block_b, 16))
    bt = min(block_b, _round_up(B, 16))
    if B > 16:
        bt = min(bt, _round_up(pl.cdiv(B, 2), 16))
    bt = max(bt, 16)
    assert bt % 16 == 0
    grid = (pl.cdiv(B, bt),)

    def resident(shape):
        # Weights/biases: constant index_map -> single VMEM-resident copy.
        return pl.BlockSpec(shape, lambda i: (0,) * len(shape))

    flops = 2 * B * (IN_DIM * H1 + H1 * H2_PAD + H2_PAD * OUT_PAD)
    bytes_accessed = (
        B * IN_DIM * 4                       # x stream (f32)
        + B * OUT_PAD * 2                    # output slab (bf16)
        + (w1p.size + w2p.size + w3p.size) * 2
        + (b1p.size + b2p.size + b3p.size) * 4
    )

    # VMEM budget: double-buffered f32 x tile dominates; keep under v7x's 64 MiB.
    vmem_est = (
        2 * bt * IN_DIM * 4                  # double-buffered f32 x tiles
        + 2 * bt * OUT_PAD * 2               # double-buffered bf16 out tiles
        + bt * (H1 + H2_PAD) * 8             # in-kernel activations (rough)
        + (2 << 20)                          # weights/biases + headroom
    )
    vmem_limit = min(max(32 << 20, vmem_est + (8 << 20)), 56 << 20)

    out_padded = pl.pallas_call(
        mlp_kernel,
        out_shape=jax.ShapeDtypeStruct((B, OUT_PAD), jnp.bfloat16),
        grid=grid,
        in_specs=[
            pl.BlockSpec((bt, IN_DIM), lambda i: (i, 0)),   # x: streamed over batch
            resident(w1p.shape), resident(b1p.shape),
            resident(w2p.shape), resident(b2p.shape),
            resident(w3p.shape), resident(b3p.shape),
        ],
        out_specs=pl.BlockSpec((bt, OUT_PAD), lambda i: (i, 0)),
        compiler_params=pltpu.CompilerParams(
            dimension_semantics=("parallel",),              # megacore on v7x
            vmem_limit_bytes=int(vmem_limit),
        ),
        cost_estimate=pl.CostEstimate(
            flops=flops, transcendentals=0, bytes_accessed=bytes_accessed),
    )(x, w1p, b1p, w2p, b2p, w3p, b3p)

    # Slice + f32 cast fuse with the consumer under jit (tiny: 40 B/row).
    return out_padded[:, :OUT].astype(jnp.float32)


def init_params(key):
    """Deterministic init matching nn.Linear shapes (Kaiming-uniform-ish)."""
    def linear(key, fan_in, fan_out):
        kw, kb = jax.random.split(key)
        bound = 1.0 / jnp.sqrt(fan_in)
        # Stored as (in, out) — i.e. already transposed vs torch's (out, in).
        w = jax.random.uniform(kw, (fan_in, fan_out), jnp.float32, -bound, bound)
        b = jax.random.uniform(kb, (1, fan_out), jnp.float32, -bound, bound)
        return w, b

    k1, k2, k3 = jax.random.split(key, 3)
    w1, b1 = linear(k1, IN_DIM, H1)
    w2, b2 = linear(k2, H1, H2)
    w3, b3 = linear(k3, H2, OUT)
    return (w1, b1, w2, b2, w3, b3)


def net_forward_ref(x_nchw, params):
    """Pure-JAX reference with matching bf16 operands / f32 accumulation / bf16 store."""
    w1, b1, w2, b2, w3, b3 = params
    x = x_nchw.reshape(x_nchw.shape[0], IN_DIM).astype(jnp.bfloat16)
    h1 = jnp.maximum(
        jnp.dot(x, w1.astype(jnp.bfloat16), preferred_element_type=jnp.float32) + b1, 0.0)
    h2 = jnp.maximum(
        jnp.dot(h1.astype(jnp.bfloat16), w2.astype(jnp.bfloat16),
                preferred_element_type=jnp.float32) + b2, 0.0)
    logits = jnp.dot(h2.astype(jnp.bfloat16), w3.astype(jnp.bfloat16),
                     preferred_element_type=jnp.float32) + b3
    return logits.astype(jnp.bfloat16).astype(jnp.float32)


if __name__ == "__main__":
    key = jax.random.PRNGKey(0)
    kx, kp = jax.random.split(key)

    B = 256
    x = jax.random.normal(kx, (B, 1, 28, 28), jnp.float32)  # NCHW, like torch MNIST
    params = init_params(kp)

    # Default block_b=2048 -> bt capped to 128 here (>=2 grid steps), exercising
    # the pipelined batch grid. (Large batches use the full 2048-row tile.)
    out = net_forward(x, params)
    out = jax.block_until_ready(out)

    ref = net_forward_ref(x, params)
    assert out.shape == (B, 10)
    assert jnp.allclose(out, ref, atol=1e-2, rtol=1e-2), "mismatch vs reference"

    print("KERNEL_OK")
</pallas_src>

<mosaic_0001>
module attributes {stable_mosaic.version = 11 : i64} {
  func.func @mlp_kernel(%arg0: i32, %arg1: memref<128x784xf32, #tpu.memory_space<vmem>>, %arg2: memref<784x128xbf16, #tpu.memory_space<vmem>>, %arg3: memref<1x128xf32, #tpu.memory_space<vmem>>, %arg4: memref<128x128xbf16, #tpu.memory_space<vmem>>, %arg5: memref<1x128xf32, #tpu.memory_space<vmem>>, %arg6: memref<128x128xbf16, #tpu.memory_space<vmem>>, %arg7: memref<1x128xf32, #tpu.memory_space<vmem>>, %arg8: memref<128x128xbf16, #tpu.memory_space<vmem>>) attributes {dimension_semantics = [#tpu.dimension_semantics<parallel>], iteration_bounds = array<i64: 2>, scalar_prefetch = 0 : i64, scratch_operands = 0 : i64, tpu.core_type = #tpu.core_type<tc>, window_params = [{transform_indices = @transform_0, window_bounds = array<i64: 128, 784>}, {pipeline_mode = #tpu.pipeline_mode<synchronous>, transform_indices = @transform_1, window_bounds = array<i64: 784, 128>}, {pipeline_mode = #tpu.pipeline_mode<synchronous>, transform_indices = @transform_2, window_bounds = array<i64: 1, 128>}, {pipeline_mode = #tpu.pipeline_mode<synchronous>, transform_indices = @transform_3, window_bounds = array<i64: 128, 128>}, {pipeline_mode = #tpu.pipeline_mode<synchronous>, transform_indices = @transform_4, window_bounds = array<i64: 1, 128>}, {pipeline_mode = #tpu.pipeline_mode<synchronous>, transform_indices = @transform_5, window_bounds = array<i64: 128, 128>}, {pipeline_mode = #tpu.pipeline_mode<synchronous>, transform_indices = @transform_6, window_bounds = array<i64: 1, 128>}, {transform_indices = @transform_7, window_bounds = array<i64: 128, 128>}]} {
    %c0 = arith.constant 0 : index
    %c0_0 = arith.constant 0 : index
    %0 = vector.load %arg1[%c0, %c0_0] : memref<128x784xf32, #tpu.memory_space<vmem>>, vector<128x784xf32>
    %1 = arith.truncf %0 : vector<128x784xf32> to vector<128x784xbf16>
    %c0_1 = arith.constant 0 : index
    %c0_2 = arith.constant 0 : index
    %2 = vector.load %arg2[%c0_1, %c0_2] : memref<784x128xbf16, #tpu.memory_space<vmem>>, vector<784x128xbf16>
    %cst = arith.constant dense<0.000000e+00> : vector<128x128xf32>
    %3 = tpu.matmul %1, %2, %cst {dimension_numbers = #tpu.dot_dimension_numbers<[1], [0], [0], [1], [0, 0, 1, 1], [], []>} : vector<128x784xbf16>, vector<784x128xbf16>, vector<128x128xf32> -> vector<128x128xf32>
    %c0_3 = arith.constant 0 : index
    %c0_4 = arith.constant 0 : index
    %4 = vector.load %arg3[%c0_3, %c0_4] : memref<1x128xf32, #tpu.memory_space<vmem>>, vector<1x128xf32>
    %5 = vector.broadcast %4 : vector<1x128xf32> to vector<128x128xf32>
    %6 = arith.addf %3, %5 : vector<128x128xf32>
    %cst_5 = arith.constant 0.000000e+00 : f32
    %7 = vector.broadcast %cst_5 : f32 to vector<128x128xf32>
    %8 = arith.maximumf %6, %7 : vector<128x128xf32>
    %9 = arith.truncf %8 : vector<128x128xf32> to vector<128x128xbf16>
    %c0_6 = arith.constant 0 : index
    %c0_7 = arith.constant 0 : index
    %10 = vector.load %arg4[%c0_6, %c0_7] : memref<128x128xbf16, #tpu.memory_space<vmem>>, vector<128x128xbf16>
    %cst_8 = arith.constant dense<0.000000e+00> : vector<128x128xf32>
    %11 = tpu.matmul %9, %10, %cst_8 {dimension_numbers = #tpu.dot_dimension_numbers<[1], [0], [0], [1], [0, 0, 1, 1], [], []>} : vector<128x128xbf16>, vector<128x128xbf16>, vector<128x128xf32> -> vector<128x128xf32>
    %c0_9 = arith.constant 0 : index
    %c0_10 = arith.constant 0 : index
    %12 = vector.load %arg5[%c0_9, %c0_10] : memref<1x128xf32, #tpu.memory_space<vmem>>, vector<1x128xf32>
    %13 = vector.broadcast %12 : vector<1x128xf32> to vector<128x128xf32>
    %14 = arith.addf %11, %13 : vector<128x128xf32>
    %cst_11 = arith.constant 0.000000e+00 : f32
    %15 = vector.broadcast %cst_11 : f32 to vector<128x128xf32>
    %16 = arith.maximumf %14, %15 : vector<128x128xf32>
    %17 = arith.truncf %16 : vector<128x128xf32> to vector<128x128xbf16>
    %c0_12 = arith.constant 0 : index
    %c0_13 = arith.constant 0 : index
    %18 = vector.load %arg6[%c0_12, %c0_13] : memref<128x128xbf16, #tpu.memory_space<vmem>>, vector<128x128xbf16>
    %cst_14 = arith.constant dense<0.000000e+00> : vector<128x128xf32>
    %19 = tpu.matmul %17, %18, %cst_14 {dimension_numbers = #tpu.dot_dimension_numbers<[1], [0], [0], [1], [0, 0, 1, 1], [], []>} : vector<128x128xbf16>, vector<128x128xbf16>, vector<128x128xf32> -> vector<128x128xf32>
    %c0_15 = arith.constant 0 : index
    %c0_16 = arith.constant 0 : index
    %20 = vector.load %arg7[%c0_15, %c0_16] : memref<1x128xf32, #tpu.memory_space<vmem>>, vector<1x128xf32>
    %21 = vector.broadcast %20 : vector<1x128xf32> to vector<128x128xf32>
    %22 = arith.addf %19, %21 : vector<128x128xf32>
    %23 = arith.truncf %22 : vector<128x128xf32> to vector<128x128xbf16>
    %c0_17 = arith.constant 0 : index
    %c0_18 = arith.constant 0 : index
    %24 = vector.load %arg8[%c0_17, %c0_18] : memref<128x128xbf16, #tpu.memory_space<vmem>>, vector<128x128xbf16>
    tpu.vector_store %arg8[%c0_17, %c0_18], %23 {strides = array<i32>} : memref<128x128xbf16, #tpu.memory_space<vmem>>, vector<128x128xbf16>,
    return
  }
  func.func @transform_0(%arg0: i32) -> (i32, i32) {
    %c0_i32 = arith.constant 0 : i32
    %c0_i32_0 = arith.constant 0 : i32
    return %arg0, %c0_i32 : i32, i32
  }
  func.func @transform_1(%arg0: i32) -> (i32, i32) {
    %c0_i32 = arith.constant 0 : i32
    %c0_i32_0 = arith.constant 0 : i32
    %c0_i32_1 = arith.constant 0 : i32
    return %c0_i32, %c0_i32_0 : i32, i32
  }
  func.func @transform_2(%arg0: i32) -> (i32, i32) {
    %c0_i32 = arith.constant 0 : i32
    %c0_i32_0 = arith.constant 0 : i32
    %c0_i32_1 = arith.constant 0 : i32
    return %c0_i32, %c0_i32_0 : i32, i32
  }
  func.func @transform_3(%arg0: i32) -> (i32, i32) {
    %c0_i32 = arith.constant 0 : i32
    %c0_i32_0 = arith.constant 0 : i32
    %c0_i32_1 = arith.constant 0 : i32
    return %c0_i32, %c0_i32_0 : i32, i32
  }
  func.func @transform_4(%arg0: i32) -> (i32, i32) {
    %c0_i32 = arith.constant 0 : i32
    %c0_i32_0 = arith.constant 0 : i32
    %c0_i32_1 = arith.constant 0 : i32
    return %c0_i32, %c0_i32_0 : i32, i32
  }
  func.func @transform_5(%arg0: i32) -> (i32, i32) {
    %c0_i32 = arith.constant 0 : i32
    %c0_i32_0 = arith.constant 0 : i32
    %c0_i32_1 = arith.constant 0 : i32
    return %c0_i32, %c0_i32_0 : i32, i32
  }
  func.func @transform_6(%arg0: i32) -> (i32, i32) {
    %c0_i32 = arith.constant 0 : i32
    %c0_i32_0 = arith.constant 0 : i32
    %c0_i32_1 = arith.constant 0 : i32
    return %c0_i32, %c0_i32_0 : i32, i32
  }
  func.func @transform_7(%arg0: i32) -> (i32, i32) {
    %c0_i32 = arith.constant 0 : i32
    %c0_i32_0 = arith.constant 0 : i32
    return %arg0, %c0_i32 : i32, i32
  }
}

</mosaic_0001>

<bundles_post_ra>
// kernel: tpu_custom_call.1
= control target key start
LH: loop header
LB: loop body
LE: loop exit
PB: predicated region body
PF: predicated region fallthrough
CT: control target
= control target key end

     0   :  { %12 = vsyncpa [#allocation3], 0  ;;  %s3026_s0 = inlined_call_operand.vmem [shape: f32[256,784], index: 0, kind: input, shape index: {}]   ;;  %s3027_s1 = inlined_call_operand.vmem [shape: bf16[784,128], index: 1, kind: input, shape index: {}]   ;;  %s3028_s2 = inlined_call_operand.vmem [shape: f32[1,128], index: 2, kind: input, shape index: {}]   ;;  %s3029_s3 = inlined_call_operand.vmem [shape: bf16[128,128], index: 3, kind: input, shape index: {}]   ;;  %s3030_s4 = inlined_call_operand.vmem [shape: f32[1,128], index: 4, kind: input, shape index: {}]   ;;  %s3031_s5 = inlined_call_operand.vmem [shape: bf16[128,128], index: 5, kind: input, shape index: {}]   ;;  %s3032_s6 = inlined_call_operand.vmem [shape: f32[1,128], index: 6, kind: input, shape index: {}]   ;;  %s3033_s7 = inlined_call_operand.hbm [shape: bf16[256,128], index: 7, kind: output, shape index: {}]  }
   0x1   :  { %14 = vsyncpa [#allocation3 + $0x1], 0  ;;  %s2517_s24 = smov 0   ;;  %s2519_s25 = smov 0  }
   0x2   :  { %s2521_s26 = smov 0   ;;  %s2523_s27 = smov 0  }
   0x3 LB: > { %s2538_s28 = sadd.s32 4294967295, %s2472_s27   ;;  %s1804_s29 = sadd.s32 4294967294, %s2472_s27   ;;  %s2472_s27 = sphi %s2523_s27, %s3039_s27   ;;  %s2468_s26 = sphi %s2521_s26, %s3038_s26   ;;  %s2464_s25 = sphi %s2519_s25, %s3037_s25   ;;  %s2460_s24 = sphi %s2517_s24, %s3036_s24  }
   0x4   : > { %s2542_s30 = sadd.s32 1, %s2472_s27   ;;  %s179_s8 = sadd.s32 1, %s2468_s26 }
   0x5   : > { %s176_s9 = ssub.s32 %s2472_s27, %s2542_s30  ;;  %p189_p0 = scmp.ne.s32.totalorder %s2468_s26, %s2464_s25 }
   0x6   : > { %p177_p1 = scmp.eq.s32.totalorder %s176_s9, 0  ;;  %p190_p2 = scmp.eq.s32.totalorder %s2538_s28, 1 }
   0x7   : > { %p195_p3 = scmp.ne.s32.totalorder %s2464_s25, %s2460_s24  ;;  %p196_p4 = scmp.eq.s32.totalorder %s1804_s29, 1 }
   0x8   : > { %s2553_s10 = scalar_select %p177_p1, %s2468_s26, %s179_s8  }
   0x9   : > { %p2555_p5 = por %p190_p2, %p189_p0  ;;  %p2559_p6 = por %p196_p4, %p195_p3 }
   0xa   : > { %p1807_p7 = scmp.ge.s32.totalorder %s2472_s27, 1  ;;  %p242_p8 = scmp.lt.s32.totalorder %s2472_s27, 3 }
   0xc   : > { %p243_p9 = pnand %p1807_p7, %p242_p8 }
   0xd   : > { %v2345_v0 = vld [vmem:[%s3027_s1 + $0x40] sm:$0xff] (!%p243_p9)   ;;  %v2349_v4 = vld [vmem:[%s3027_s1 + $0x48] sm:$0xff] (!%p243_p9)   ;;  %v2353_v8 = vld [vmem:[%s3027_s1 + $0x50] sm:$0xff] (!%p243_p9)   ;;  %s1809_s15 = sshll.u32 (!%p243_p9), %s2538_s28, 4  ;;  %vm851_vm0 = vcmask (!%p243_p9), 130048   ;;  %s272_s16 = sand.u32 (!%p243_p9), 1, %s2464_s25  }
   0xe   : > { %246 = sbr.rel (%p243_p9) target bundleno = 840 (0x348), region = 48  ;;  %v2346_v1 = vld [vmem:[%s3027_s1 + $0xc0] sm:$0xff] (!%p243_p9)   ;;  %1972 = vmatprep.subr.bf16.mxu0 (!%p243_p9), %v2345_v0  ;;  %v2350_v5 = vld [vmem:[%s3027_s1 + $0xc8] sm:$0xff] (!%p243_p9)   ;;  %v2354_v9 = vld [vmem:[%s3027_s1 + $0xd0] sm:$0xff] (!%p243_p9)   ;;  %p276_p10 = scmp.lt.s32.totalorder (!%p243_p9), %s1809_s15, 31 }
   0xf   : > { %v2347_v2 = vld [vmem:[%s3027_s1] sm:$0xff] (!%p243_p9)   ;;  %2036 = vmatprep.subr.bf16.mxu1 (!%p243_p9), %v2346_v1  ;;  %v2351_v6 = vld [vmem:[%s3027_s1 + $0x8] sm:$0xff] (!%p243_p9)   ;;  %v2355_v10 = vld [vmem:[%s3027_s1 + $0x10] sm:$0xff] (!%p243_p9)   ;;  %s1808_s19 = sshll.u32 (!%p243_p9), %s272_s16, 6 }
  0x10   : > { %v2348_v3 = vld [vmem:[%s3027_s1 + $0x80] sm:$0xff] (!%p243_p9)   ;;  %1973 = vmatpush3.bf16.msra.mxu0 (!%p243_p9), %v2347_v2  ;;  %v2352_v7 = vld [vmem:[%s3027_s1 + $0x88] sm:$0xff] (!%p243_p9)   ;;  %v2356_v11 = vld [vmem:[%s3027_s1 + $0x90] sm:$0xff] (!%p243_p9)   ;;  %s2964_s20 = scalar_lea.vmem (!%p243_p9), [#allocation2], %s1808_s19 }
  0x11   : > { %2037 = vmatpush3.bf16.msra.mxu1 (!%p243_p9), %v2348_v3  ;;  %1974 = vmatprep.subr.bf16.mxu0 (!%p243_p9), %v2349_v4  ;;  %v2357_v12 = vld [vmem:[%s3027_s1 + $0x58] sm:$0xff] (!%p243_p9)   ;;  %v2361_v16 = vld [vmem:[%s3027_s1 + $0x60] sm:$0xff] (!%p243_p9)   ;;  %v2365_v20 = vld [vmem:[%s3027_s1 + $0x68] sm:$0xff] (!%p243_p9)   ;;  %s1742_s21 = sshll.u32 (!%p243_p9), %s2964_s20, 4  ;;  %s2979_s21 = int_to_ptr.vmem [resolvable:$true] %s1742_s21 }
  0x12   : > { %2038 = vmatprep.subr.bf16.mxu1 (!%p243_p9), %v2350_v5  ;;  %v2358_v13 = vld [vmem:[%s3027_s1 + $0xd8] sm:$0xff] (!%p243_p9)   ;;  %v2362_v17 = vld [vmem:[%s3027_s1 + $0xe0] sm:$0xff] (!%p243_p9)   ;;  %v2366_v21 = vld [vmem:[%s3027_s1 + $0xe8] sm:$0xff] (!%p243_p9)   ;;  %s2410_s13 = scalar_lea.vmem (!%p243_p9), %s2979_s21, 1024 }
  0x13   : > { %v2359_v14 = vld [vmem:[%s3027_s1 + $0x18] sm:$0xff] (!%p243_p9)   ;;  %v2363_v18 = vld [vmem:[%s3027_s1 + $0x20] sm:$0xff] (!%p243_p9)   ;;  %v2367_v22 = vld [vmem:[%s3027_s1 + $0x28] sm:$0xff] (!%p243_p9)   ;;  %p2411_p11 = scmp.ne.s32.totalorder (!%p243_p9), %s2979_s21, %s2410_s13 }
  0x14   : > { %1975 = vmatpush3.bf16.msra.mxu0 (!%p243_p9), %v2351_v6  ;;  %v2360_v15 = vld [vmem:[%s3027_s1 + $0x98] sm:$0xff] (!%p243_p9)   ;;  %v2364_v19 = vld [vmem:[%s3027_s1 + $0xa0] sm:$0xff] (!%p243_p9)   ;;  %v2368_v23 = vld [vmem:[%s3027_s1 + $0xa8] sm:$0xff] (!%p243_p9)  }
  0x15   : > { %2039 = vmatpush3.bf16.msra.mxu1 %v2352_v7  ;;  %1976 = vmatprep.subr.bf16.mxu0 %v2353_v8  ;;  %s3041_s15 = smov (!%p276_p10, %s1809_s15), 31  ;;  %v2369_v24 = vld [vmem:[%s3027_s1 + $0x70] sm:$0xff]   ;;  %v2373_v28 = vld [vmem:[%s3027_s1 + $0x78] sm:$0xff]   ;;  %v2377_v44 = vld [vmem:[%s3027_s1 + $0x140] sm:$0xff]   ;;  %p2412_p12 = pnand %p2411_p11, %p2555_p5 }
  0x16   : > { %2040 = vmatprep.subr.bf16.mxu1 %v2354_v9  ;;  %v2370_v25 = vld [vmem:[%s3027_s1 + $0xf0] sm:$0xff]   ;;  %s2303_s8 = smul.u32 56, %s3041_s15  ;;  %v2374_v29 = vld [vmem:[%s3027_s1 + $0xf8] sm:$0xff]   ;;  %v2378_v45 = vld [vmem:[%s3027_s1 + $0x100] sm:$0xff]   ;;  %s1924_s15 = sshll.u32 %s2538_s28, 10 }
  0x17   : > { %v2371_v26 = vld [vmem:[%s3027_s1 + $0x30] sm:$0xff]   ;;  %v2375_v30 = vld [vmem:[%s3027_s1 + $0x38] sm:$0xff]   ;;  %v2379_v57 = vld [vmem:[%s3027_s1 + $0x148] sm:$0xff]   ;;  %s2977_s9 = scalar_lea.hbm %s3033_s7, %s1924_s15  ;;  %s2985_s28 = scalar_lea.sflag [#allocation3], %s272_s16 }
  0x18   : > { %1977 = vmatpush3.bf16.msra.mxu0 %v2355_v10  ;;  %v2372_v27 = vld [vmem:[%s3027_s1 + $0xb0] sm:$0xff]   ;;  %s2659_s22 = scalar_lea.vmem %s3026_s0, %s2303_s8  ;;  %v2376_v31 = vld [vmem:[%s3027_s1 + $0xb8] sm:$0xff]   ;;  %v2380_v59 = vld [vmem:[%s3027_s1 + $0x108] sm:$0xff]   ;;  %p2413_p13 = pneg %p2412_p12 }
  0x19   : > { %2041 = vmatpush3.bf16.msra.mxu1 %v2356_v11  ;;  %1978 = vmatprep.subr.bf16.mxu0 %v2357_v12  ;;  %v285_v32 = vld [vmem:[%s2659_s22 + $0x8] sm:$0xff]  ;;  %v292_v33 = vld [vmem:[%s2659_s22 + $0x40] sm:$0xff]  ;;  %v287_v34 = vld [vmem:[%s2659_s22 + $0x18] sm:$0xff]  ;;  %s2474_s8 = smov [#allocation2]  }
  0x1a   : > { %2042 = vmatprep.subr.bf16.mxu1 %v2358_v13  ;;  %v397_v35 = vpack.c.bf16 %v292_v33, %v285_v32  ;;  %v294_v36 = vld [vmem:[%s2659_s22 + $0x50] sm:$0xff]  ;;  %v284_v37 = vld [vmem:[%s2659_s22] sm:$0xff]  ;;  %v291_v38 = vld [vmem:[%s2659_s22 + $0x38] sm:$0xff] }
  0x1b   : > { %v399_v39 = vpack.c.bf16 %v294_v36, %v287_v34  ;;  %v396_v40 = vpack.c.bf16 %v291_v38, %v284_v37  ;;  %v286_v41 = vld [vmem:[%s2659_s22 + $0x10] sm:$0xff]  ;;  %v293_v42 = vld [vmem:[%s2659_s22 + $0x48] sm:$0xff]  ;;  %v299_v46 = vld [vmem:[%s2659_s22 + $0x78] sm:$0xff] }
  0x1c   : > { %1979 = vmatpush3.bf16.msra.mxu0 %v2359_v14  ;;  %908 = vmatprep.mubr.bf16.mxu0 %v397_v35  ;;  %v398_v43 = vpack.c.bf16 %v293_v42, %v286_v41  ;;  %v306_v47 = vld [vmem:[%s2659_s22 + $0xb0] sm:$0xff]  ;;  %v301_v48 = vld [vmem:[%s2659_s22 + $0x88] sm:$0xff]  ;;  %v308_v49 = vld [vmem:[%s2659_s22 + $0xc0] sm:$0xff] }
  0x1d   : > { %2043 = vmatpush3.bf16.msra.mxu1 %v2360_v15  ;;  %1980 = vmatprep.subr.bf16.mxu0 %v2361_v16  ;;  %v404_v50 = vpack.c.bf16 %v306_v47, %v299_v46  ;;  %v406_v51 = vpack.c.bf16 %v308_v49, %v301_v48  ;;  %v298_v52 = vld [vmem:[%s2659_s22 + $0x70] sm:$0xff]  ;;  %v305_v53 = vld [vmem:[%s2659_s22 + $0xa8] sm:$0xff]  ;;  %v300_v54 = vld [vmem:[%s2659_s22 + $0x80] sm:$0xff] }
  0x1e   : > { %2044 = vmatprep.subr.bf16.mxu1 %v2362_v17  ;;  %1005 = vmatprep.mubr.bf16.mxu1 %v399_v39  ;;  %v307_v55 = vld [vmem:[%s2659_s22 + $0xb8] sm:$0xff]  ;;  %v403_v56 = vpack.c.bf16 %v305_v53, %v298_v52  ;;  %v313_v60 = vld [vmem:[%s2659_s22 + $0xe8] sm:$0xff]  ;;  %v320_v61 = vld [vmem:[%s2659_s22 + $0x120] sm:$0xff] }
  0x1f   : > { %v405_v58 = vpack.c.bf16 %v307_v55, %v300_v54  ;;  %v411_v62 = vpack.c.bf16 %v320_v61, %v313_v60  ;;  %v315_v63 = vld [vmem:[%s2659_s22 + $0xf8] sm:$0xff]  ;;  %v322_v0 = vld [vmem:[%s2659_s22 + $0x130] sm:$0xff]  ;;  %v312_v2 = vld [vmem:[%s2659_s22 + $0xe0] sm:$0xff] }
  0x20   : > { %1981 = vmatpush3.bf16.msra.mxu0 %v2363_v18  ;;  %v413_v1 = vpack.c.bf16 %v322_v0, %v315_v63  ;;  %v319_v3 = vld [vmem:[%s2659_s22 + $0x118] sm:$0xff]  ;;  %v314_v4 = vld [vmem:[%s2659_s22 + $0xf0] sm:$0xff]  ;;  %v321_v7 = vld [vmem:[%s2659_s22 + $0x128] sm:$0xff] }
  0x21   : > { %2045 = vmatpush3.bf16.msra.mxu1 %v2364_v19  ;;  %1982 = vmatprep.subr.bf16.mxu0 %v2365_v20  ;;  %v2381_v5 = vld [vmem:[%s3027_s1 + $0x150] sm:$0xff]   ;;  %v327_v8 = vld [vmem:[%s2659_s22 + $0x158] sm:$0xff]  ;;  %v329_v10 = vld [vmem:[%s2659_s22 + $0x168] sm:$0xff]  ;;  %v410_v12 = vpack.c.bf16 %v319_v3, %v312_v2  ;;  %v412_v13 = vpack.c.bf16 %v321_v7, %v314_v4 }
  0x22   : > { %2046 = vmatprep.subr.bf16.mxu1 %v2366_v21  ;;  %v2382_v6 = vld [vmem:[%s3027_s1 + $0x110] sm:$0xff]   ;;  %v336_v11 = vld [vmem:[%s2659_s22 + $0x1a0] sm:$0xff]  ;;  %v2383_v15 = vld [vmem:[%s3027_s1 + $0x158] sm:$0xff]  }
  0x23   : > { %v334_v9 = vld [vmem:[%s2659_s22 + $0x190] sm:$0xff]  ;;  %v420_v16 = vpack.c.bf16 %v336_v11, %v329_v10  ;;  %v2384_v17 = vld [vmem:[%s3027_s1 + $0x118] sm:$0xff]   ;;  %v333_v19 = vld [vmem:[%s2659_s22 + $0x188] sm:$0xff] }
  0x24   : > { %1983 = vmatpush3.bf16.msra.mxu0 %v2367_v22  ;;  %v418_v14 = vpack.c.bf16 %v334_v9, %v327_v8  ;;  %v326_v18 = vld [vmem:[%s2659_s22 + $0x150] sm:$0xff]  ;;  %v328_v20 = vld [vmem:[%s2659_s22 + $0x160] sm:$0xff]  ;;  %v335_v21 = vld [vmem:[%s2659_s22 + $0x198] sm:$0xff] }
  0x25   : > { %2047 = vmatpush3.bf16.msra.mxu1 %v2368_v23  ;;  %1984 = vmatprep.subr.bf16.mxu0 %v2369_v24  ;;  %v341_v22 = vld [vmem:[%s2659_s22 + $0x1c8] sm:$0xff]  ;;  %v348_v23 = vld [vmem:[%s2659_s22 + $0x200] sm:$0xff]  ;;  %v347_v35 = vld [vmem:[%s2659_s22 + $0x1f8] sm:$0xff] }
  0x26   : > { %2048 = vmatprep.subr.bf16.mxu1 %v2370_v25  ;;  %v2385_v24 = vld [vmem:[%s3027_s1 + $0x160] sm:$0xff]   ;;  %v343_v25 = vld [vmem:[%s2659_s22 + $0x1d8] sm:$0xff]  ;;  %v2387_v32 = vld [vmem:[%s3027_s1 + $0x168] sm:$0xff]  }
  0x27   : > { %v2388_v33 = vld [vmem:[%s3027_s1 + $0x128] sm:$0xff]   ;;  %v340_v34 = vld [vmem:[%s2659_s22 + $0x1c0] sm:$0xff]  ;;  %v342_v36 = vld [vmem:[%s2659_s22 + $0x1d0] sm:$0xff] }
  0x28   : > { %1985 = vmatpush3.bf16.msra.mxu0 %v2371_v26  ;;  %v350_v26 = vld [vmem:[%s2659_s22 + $0x210] sm:$0xff]  ;;  %v349_v37 = vld [vmem:[%s2659_s22 + $0x208] sm:$0xff]  ;;  %v355_v38 = vld [vmem:[%s2659_s22 + $0x238] sm:$0xff] }
  0x29   : > { %2049 = vmatpush3.bf16.msra.mxu1 %v2372_v27  ;;  %1986 = vmatprep.subr.bf16.mxu0 %v2373_v28  ;;  %v2386_v27 = vld [vmem:[%s3027_s1 + $0x120] sm:$0xff]   ;;  %v417_v28 = vpack.c.bf16 %v333_v19, %v326_v18  ;;  %v362_v39 = vld [vmem:[%s2659_s22 + $0x270] sm:$0xff]  ;;  %v2391_v49 = vld [vmem:[%s3027_s1 + $0x178] sm:$0xff]  }
  0x2a   : > { %2050 = vmatprep.subr.bf16.mxu1 %v2374_v29  ;;  %v419_v29 = vpack.c.bf16 %v335_v21, %v328_v20  ;;  %v364_v41 = vld [vmem:[%s2659_s22 + $0x280] sm:$0xff]  ;;  %v2389_v42 = vld [vmem:[%s3027_s1 + $0x170] sm:$0xff]   ;;  %v432_v46 = vpack.c.bf16 %v362_v39, %v355_v38  ;;  %v2392_v52 = vld [vmem:[%s3027_s1 + $0x138] sm:$0xff]  }
  0x2b   : > { %v354_v48 = vld [vmem:[%s2659_s22 + $0x230] sm:$0xff]  ;;  %v363_v53 = vld [vmem:[%s2659_s22 + $0x278] sm:$0xff]  ;;  %v369_v54 = vld [vmem:[%s2659_s22 + $0x2a8] sm:$0xff] }
  0x2c   : > { %1987 = vmatpush3.bf16.msra.mxu0 %v2375_v30  ;;  %v425_v30 = vpack.c.bf16 %v348_v23, %v341_v22  ;;  %v376_v55 = vld [vmem:[%s2659_s22 + $0x2e0] sm:$0xff]  ;;  %v375_v0 = vld [vmem:[%s2659_s22 + $0x2d8] sm:$0xff]  ;;  %v377_v2 = vld [vmem:[%s2659_s22 + $0x2e8] sm:$0xff] }
  0x2d   : > { %2051 = vmatpush3.bf16.msra.mxu1 %v2376_v31  ;;  %2100 = vmatprep.subr.bf16.mxu0 %v2377_v44  ;;  %v427_v31 = vpack.c.bf16 %v350_v26, %v343_v25  ;;  %v439_v60 = vpack.c.bf16 %v376_v55, %v369_v54  ;;  %v368_v63 = vld [vmem:[%s2659_s22 + $0x2a0] sm:$0xff]  ;;  %v383_v3 = vld [vmem:[%s2659_s22 + $0x318] sm:$0xff]  ;;  %v390_v4 = vld [vmem:[%s2659_s22 + $0x350] sm:$0xff] }
  0x2e   : > { %2287 = vmatprep.subr.bf16.mxu1 %v2377_v44  ;;  %v2390_v44 = vld [vmem:[%s3027_s1 + $0x130] sm:$0xff]   ;;  %v438_v7 = vpack.c.bf16 %v375_v0, %v368_v63  ;;  %v446_v9 = vpack.c.bf16 %v390_v4, %v383_v3  ;;  %v380_v18 = vld [vmem:[%s2659_s22 + $0x300] sm:$0xff]  ;;  %v379_v26 = vld [vmem:[%s2659_s22 + $0x2f8] sm:$0xff] }
  0x2f   : > { %909 = vmatmul.mubr.bf16.vlgmr.msra.gmra.mrb[0].mxu0 %v396_v40  ;;  %v357_v40 = vld [vmem:[%s2659_s22 + $0x248] sm:$0xff]  ;;  %v382_v11 = vld [vmem:[%s2659_s22 + $0x310] sm:$0xff]  ;;  %v288_v23 = vld [vmem:[%s2659_s22 + $0x20] sm:$0xff] }
  0x30   : > { %1006 = vmatmul.mubr.bf16.vlgmr.msra.gmra.mrb[0].mxu1 %v398_v43  ;;  %2101 = vmatpush3.bf16.msra.mxu0 %v2378_v45  ;;  %v424_v43 = vpack.c.bf16 %v347_v35, %v340_v34  ;;  %v434_v47 = vpack.c.bf16 %v364_v41, %v357_v40  ;;  %v372_v25 = vld [vmem:[%s2659_s22 + $0x2c0] sm:$0xff]  ;;  %v302_v35 = vld [vmem:[%s2659_s22 + $0x90] sm:$0xff]  ;;  %v393_v38 = vld [vmem:[%s2659_s22 + $0x368] sm:$0xff] }
  0x31   : > { %2295 = vmatpush3.bf16.msra.mxu1 %v2378_v45  ;;  %916 = vmatprep.mubr.bf16.mxu0 %v404_v50  ;;  %v426_v45 = vpack.c.bf16 %v349_v37, %v342_v36  ;;  %v361_v50 = vld [vmem:[%s2659_s22 + $0x268] sm:$0xff]  ;;  %v386_v37 = vld [vmem:[%s2659_s22 + $0x330] sm:$0xff]  ;;  %v324_v40 = vld [vmem:[%s2659_s22 + $0x140] sm:$0xff] }
  0x32   : > { %1013 = vmatprep.mubr.bf16.mxu1 %v406_v51  ;;  %2102 = vmatprep.subr.bf16.mxu0 %v2379_v57  ;;  %v356_v51 = vld [vmem:[%s2659_s22 + $0x240] sm:$0xff]  ;;  %v309_v36 = vld [vmem:[%s2659_s22 + $0xc8] sm:$0xff]  ;;  %v290_v41 = vld [vmem:[%s2659_s22 + $0x30] sm:$0xff] }
  0x33   : > { %2288 = vmatprep.subr.bf16.mxu1 %v2379_v57  ;;  %v378_v57 = vld [vmem:[%s2659_s22 + $0x2f0] sm:$0xff]  ;;  %v317_v39 = vld [vmem:[%s2659_s22 + $0x108] sm:$0xff]  ;;  %v352_v0 = vld [vmem:[%s2659_s22 + $0x220] sm:$0xff] }
  0x34   : > { %2103 = vmatpush3.bf16.msra.mxu0 %v2380_v59  ;;  %v325_v54 = vld [vmem:[%s2659_s22 + $0x148] sm:$0xff] }
  0x35   : > { %2296 = vmatpush3.bf16.msra.mxu1 %v2380_v59  ;;  %2104 = vmatprep.subr.bf16.mxu0 %v2381_v5  ;;  %v433_v59 = vpack.c.bf16 %v363_v53, %v356_v51  ;;  %v331_v51 = vld [vmem:[%s2659_s22 + $0x178] sm:$0xff]  ;;  %v318_v53 = vld [vmem:[%s2659_s22 + $0x110] sm:$0xff]  ;;  %v345_v63 = vld [vmem:[%s2659_s22 + $0x1e8] sm:$0xff] }
  0x36   : > { %2289 = vmatprep.subr.bf16.mxu1 %v2381_v5  ;;  %v385_v5 = vld [vmem:[%s2659_s22 + $0x328] sm:$0xff] }
  0x37   : > { %917 = vmatmul.mubr.bf16.gmra.mrb[4].mxu0 %v403_v56  ;;  %v371_v56 = vld [vmem:[%s2659_s22 + $0x2b8] sm:$0xff] }
  0x38   : > { %1014 = vmatmul.mubr.bf16.gmra.mrb[4].mxu1 %v405_v58  ;;  %924 = vmatprep.mubr.bf16.mxu0 %v411_v62  ;;  %v431_v58 = vpack.c.bf16 %v361_v50, %v354_v48  ;;  %v441_v61 = vpack.c.bf16 %v378_v57, %v371_v56  ;;  %v2393_v62 = vld [vmem:[%s3027_s1 + $0x180] sm:$0xff]   ;;  %v323_v48 = vld [vmem:[%s2659_s22 + $0x138] sm:$0xff] }
  0x39   : > { %1021 = vmatprep.mubr.bf16.mxu1 %v413_v1  ;;  %2105 = vmatpush3.bf16.msra.mxu0 %v2382_v6  ;;  %v370_v1 = vld [vmem:[%s2659_s22 + $0x2b0] sm:$0xff]  ;;  %v311_v50 = vld [vmem:[%s2659_s22 + $0xd8] sm:$0xff] }
  0x3a   : > { %2297 = vmatpush3.bf16.msra.mxu1 %v2382_v6  ;;  %2106 = vmatprep.subr.bf16.mxu0 %v2383_v15  ;;  %v392_v6 = vld [vmem:[%s2659_s22 + $0x360] sm:$0xff]  ;;  %v440_v8 = vpack.c.bf16 %v377_v2, %v370_v1  ;;  %v346_v1 = vld [vmem:[%s2659_s22 + $0x1f0] sm:$0xff]  ;;  %v353_v2 = vld [vmem:[%s2659_s22 + $0x228] sm:$0xff] }
  0x3b   : > { %2290 = vmatprep.subr.bf16.mxu1 %v2383_v15  ;;  %v448_v10 = vpack.c.bf16 %v392_v6, %v385_v5  ;;  %v289_v15 = vld [vmem:[%s2659_s22 + $0x28] sm:$0xff]  ;;  %v429_v5 = vpack.c.bf16 %v352_v0, %v345_v63  ;;  %v430_v6 = vpack.c.bf16 %v353_v2, %v346_v1  ;;  %v2406_v63 = vld [vmem:[%s3031_s5 + $0x20] sm:$0xff]  }
  0x3d   : > { %2107 = vmatpush3.bf16.msra.mxu0 %v2384_v17 }
  0x3e   : > { %2298 = vmatpush3.bf16.msra.mxu1 %v2384_v17  ;;  %2108 = vmatprep.subr.bf16.mxu0 %v2385_v24  ;;  %v373_v17 = vld [vmem:[%s2659_s22 + $0x2c8] sm:$0xff] }
  0x3f   : > { %925 = vmatmul.mubr.bf16.gmra.mrb[8].mxu0 %v410_v12  ;;  %2291 = vmatprep.subr.bf16.mxu1 %v2385_v24  ;;  %v389_v12 = vld [vmem:[%s2659_s22 + $0x348] sm:$0xff]  ;;  %v443_v22 = vpack.c.bf16 %v380_v18, %v373_v17  ;;  %v295_v24 = vld [vmem:[%s2659_s22 + $0x58] sm:$0xff] }
  0x40   : > { %1022 = vmatmul.mubr.bf16.gmra.mrb[8].mxu1 %v412_v13  ;;  %932 = vmatprep.mubr.bf16.mxu0 %v418_v14  ;;  %v384_v13 = vld [vmem:[%s2659_s22 + $0x320] sm:$0xff]  ;;  %v391_v14 = vld [vmem:[%s2659_s22 + $0x358] sm:$0xff]  ;;  %v445_v19 = vpack.c.bf16 %v389_v12, %v382_v11  ;;  %v366_v12 = vld [vmem:[%s2659_s22 + $0x290] sm:$0xff] }
  0x41   : > { %1029 = vmatprep.mubr.bf16.mxu1 %v420_v16  ;;  %2109 = vmatpush3.bf16.msra.mxu0 %v2386_v27  ;;  %v296_v16 = vld [vmem:[%s2659_s22 + $0x60] sm:$0xff]  ;;  %v447_v20 = vpack.c.bf16 %v391_v14, %v384_v13  ;;  %v359_v11 = vld [vmem:[%s2659_s22 + $0x258] sm:$0xff]  ;;  %v374_v13 = vld [vmem:[%s2659_s22 + $0x2d0] sm:$0xff] }
  0x42   : > { %2299 = vmatpush3.bf16.msra.mxu1 %v2386_v27  ;;  %2110 = vmatprep.subr.bf16.mxu0 %v2387_v32  ;;  %v401_v21 = vpack.c.bf16 %v296_v16, %v289_v15  ;;  %v303_v27 = vld [vmem:[%s2659_s22 + $0x98] sm:$0xff]  ;;  %v381_v14 = vld [vmem:[%s2659_s22 + $0x308] sm:$0xff]  ;;  %v436_v17 = vpack.c.bf16 %v366_v12, %v359_v11 }
  0x43   : > { %2292 = vmatprep.subr.bf16.mxu1 %v2387_v32  ;;  %v442_v32 = vpack.c.bf16 %v379_v26, %v372_v25  ;;  %v444_v18 = vpack.c.bf16 %v381_v14, %v374_v13  ;;  %v2394_v25 = vld [vmem:[%s3029_s3] sm:$0xff]   ;;  %v2395_v26 = vld [vmem:[%s3029_s3 + $0x8] sm:$0xff]  }
  0x45   : > { %2111 = vmatpush3.bf16.msra.mxu0 %v2388_v33 }
  0x46   : > { %2300 = vmatpush3.bf16.msra.mxu1 %v2388_v33  ;;  %2112 = vmatprep.subr.bf16.mxu0 %v2389_v42 }
  0x47   : > { %933 = vmatmul.mubr.bf16.gmra.mrb[12].mxu0 %v417_v28  ;;  %2293 = vmatprep.subr.bf16.mxu1 %v2389_v42  ;;  %v310_v28 = vld [vmem:[%s2659_s22 + $0xd0] sm:$0xff]  ;;  %v297_v42 = vld [vmem:[%s2659_s22 + $0x68] sm:$0xff] }
  0x48   : > { %1030 = vmatmul.mubr.bf16.gmra.mrb[12].mxu1 %v419_v29  ;;  %940 = vmatprep.mubr.bf16.mxu0 %v425_v30  ;;  %v387_v29 = vld [vmem:[%s2659_s22 + $0x338] sm:$0xff]  ;;  %v394_v30 = vld [vmem:[%s2659_s22 + $0x370] sm:$0xff]  ;;  %v408_v33 = vpack.c.bf16 %v310_v28, %v303_v27 }
  0x49   : > { %1037 = vmatprep.mubr.bf16.mxu1 %v427_v31  ;;  %2113 = vmatpush3.bf16.msra.mxu0 %v2390_v44  ;;  %v400_v31 = vpack.c.bf16 %v295_v24, %v288_v23  ;;  %v450_v34 = vpack.c.bf16 %v394_v30, %v387_v29  ;;  %v2396_v27 = vld [vmem:[%s3029_s3 + $0x10] sm:$0xff]   ;;  %v2397_v28 = vld [vmem:[%s3029_s3 + $0x18] sm:$0xff]   ;;  %v2398_v29 = vld [vmem:[%s3029_s3 + $0x20] sm:$0xff]  }
  0x4a   : > { %2301 = vmatpush3.bf16.msra.mxu1 %v2390_v44  ;;  %2114 = vmatprep.subr.bf16.mxu0 %v2391_v49  ;;  %v449_v44 = vpack.c.bf16 %v393_v38, %v386_v37  ;;  %v2399_v30 = vld [vmem:[%s3029_s3 + $0x28] sm:$0xff]  }
  0x4b   : > { %2294 = vmatprep.subr.bf16.mxu1 %v2391_v49  ;;  %v304_v49 = vld [vmem:[%s2659_s22 + $0xa0] sm:$0xff] }
  0x4c   : > { %v409_v56 = vpack.c.bf16 %v311_v50, %v304_v49 }
  0x4d   : > { %2115 = vmatpush3.bf16.msra.mxu0 %v2392_v52 }
  0x4e   : > { %2302 = vmatpush3.bf16.msra.mxu1 %v2392_v52  ;;  %v338_v52 = vld [vmem:[%s2659_s22 + $0x1b0] sm:$0xff] }
  0x4f   : > { %941 = vmatmul.mubr.bf16.gmra.mrb[16].mxu0 %v424_v43  ;;  %2205 = vmatprep.subr.bf16.mxu1 %v2393_v62  ;;  %v407_v43 = vpack.c.bf16 %v309_v36, %v302_v35  ;;  %v422_v57 = vpack.c.bf16 %v338_v52, %v331_v51  ;;  %v2871_v36 = vld [vmem:[%s3028_s2] ss:$0 sm:$0xff]  ;;  %v2405_v52 = vld [vmem:[%s3031_s5 + $0x18] sm:$0xff]  }
  0x50   : > { %1038 = vmatmul.mubr.bf16.gmra.mrb[16].mxu1 %v426_v45  ;;  %948 = vmatprep.mubr.bf16.mxu0 %v432_v46  ;;  %v415_v45 = vpack.c.bf16 %v324_v40, %v317_v39  ;;  %v402_v46 = vpack.c.bf16 %v297_v42, %v290_v41 }
  0x51   : > { %1045 = vmatprep.mubr.bf16.mxu1 %v434_v47  ;;  %v316_v47 = vld [vmem:[%s2659_s22 + $0x100] sm:$0xff] }
  0x52   : > { %v414_v55 = vpack.c.bf16 %v323_v48, %v316_v47 }
  0x57   : > { %949 = vmatmul.mubr.bf16.gmra.mrb[20].mxu0 %v431_v58  ;;  %v416_v58 = vpack.c.bf16 %v325_v54, %v318_v53 }
  0x58   : > { %1046 = vmatmul.mubr.bf16.gmra.mrb[20].mxu1 %v433_v59  ;;  %956 = vmatprep.mubr.bf16.mxu0 %v439_v60  ;;  %v330_v59 = vld [vmem:[%s2659_s22 + $0x170] sm:$0xff]  ;;  %v337_v60 = vld [vmem:[%s2659_s22 + $0x1a8] sm:$0xff] }
  0x59   : > { %1053 = vmatprep.mubr.bf16.mxu1 %v441_v61  ;;  %v332_v61 = vld [vmem:[%s2659_s22 + $0x180] sm:$0xff]  ;;  %v421_v3 = vpack.c.bf16 %v337_v60, %v330_v59 }
  0x5f   : > { %957 = vmatmul.mubr.bf16.gmra.mrb[24].mxu0 %v438_v7  ;;  %v344_v7 = vld [vmem:[%s2659_s22 + $0x1e0] sm:$0xff] }
  0x60   : > { %1054 = vmatmul.mubr.bf16.gmra.mrb[24].mxu1 %v440_v8  ;;  %964 = vmatprep.mubr.bf16.mxu0 %v446_v9  ;;  %v351_v8 = vld [vmem:[%s2659_s22 + $0x218] sm:$0xff]  ;;  %v360_v9 = vld [vmem:[%s2659_s22 + $0x260] sm:$0xff] }
  0x61   : > { %1061 = vmatprep.mubr.bf16.mxu1 %v448_v10  ;;  %v367_v10 = vld [vmem:[%s2659_s22 + $0x298] sm:$0xff]  ;;  %v428_v15 = vpack.c.bf16 %v351_v8, %v344_v7 }
  0x62   : > { %v437_v16 = vpack.c.bf16 %v367_v10, %v360_v9 }
  0x67   : > { %965 = vmatmul.mubr.bf16.gmra.mrb[28].mxu0 %v445_v19  ;;  %v358_v19 = vld [vmem:[%s2659_s22 + $0x250] sm:$0xff] }
  0x68   : > { %1062 = vmatmul.mubr.bf16.gmra.mrb[28].mxu1 %v447_v20  ;;  %1102 = vmatprep.mubr.bf16.mxu0 %v401_v21  ;;  %v365_v20 = vld [vmem:[%s2659_s22 + $0x288] sm:$0xff]  ;;  %v388_v21 = vld [vmem:[%s2659_s22 + $0x340] sm:$0xff] }
  0x69   : > { %1150 = vmatprep.mubr.bf16.mxu1 %v443_v22  ;;  %v395_v22 = vld [vmem:[%s2659_s22 + $0x378] sm:$0xff]  ;;  %v435_v23 = vpack.c.bf16 %v365_v20, %v358_v19 }
  0x6a   : > { %v451_v24 = vpack.c.bf16 %v395_v22, %v388_v21 }
  0x6f   : > { %1103 = vmatmul.mubr.bf16.vlgmr.msra.gmra.mrb[32].mxu0 %v400_v31  ;;  %v2400_v31 = vld [vmem:[%s3029_s3 + $0x30] sm:$0xff]  }
  0x70   : > { %1151 = vmatmul.mubr.bf16.vlgmr.msra.gmra.mrb[32].mxu1 %v442_v32  ;;  %1110 = vmatprep.mubr.bf16.mxu0 %v408_v33  ;;  %v2401_v32 = vld [vmem:[%s3029_s3 + $0x38] sm:$0xff]   ;;  %v2402_v33 = vld [vmem:[%s3031_s5] sm:$0xff]  }
  0x71   : > { %1158 = vmatprep.mubr.bf16.mxu1 %v450_v34  ;;  %2206 = vmatpush3.bf16.msra.mxu1 %v2393_v62  ;;  %v339_v62 = vld [vmem:[%s2659_s22 + $0x1b8] sm:$0xff]  ;;  %v2403_v34 = vld [vmem:[%s3031_s5 + $0x8] sm:$0xff]   ;;  %s2414_s22 = sshll.u32 %s2474_s8, 4  ;;  %s2415_s22 = int_to_ptr.vmem [resolvable:$false] %s2414_s22 }
  0x72   : > { %v423_v4 = vpack.c.bf16 %v339_v62, %v332_v61  ;;  %2223 = vmatprep.subr.bf16.mxu1 %v2394_v25  ;;  %2255 = vmatprep.subr.bf16.mxu0 %v2402_v33  ;;  %s2416_s14 = scalar_lea.vmem %s2415_s22, 2048  ;;  %p2417_p0 = scmp.lt.s32.totalorder %s2979_s21, %s2415_s22 }
  0x73   : > { %2256 = vmatpush3.bf16.msra.mxu0 %v2402_v33  ;;  %p2418_p1 = scmp.lt.s32.totalorder %s2416_s14, %s2410_s13 }
  0x74   : > { %2257 = vmatprep.subr.bf16.mxu0 %v2403_v34 }
  0x75   : > { %p2419_p2 = por %p2418_p1, %p2417_p0 }
  0x77   : > { %1111 = vmatmul.mubr.bf16.gmra.mrb[36].mxu0 %v407_v43  ;;  %p2420_p3 = pnand %p2419_p2, %p2413_p13 }
  0x78   : > { %1159 = vmatmul.mubr.bf16.gmra.mrb[36].mxu1 %v449_v44  ;;  %1118 = vmatprep.mubr.bf16.mxu0 %v415_v45  ;;  %v2404_v45 = vld [vmem:[%s3031_s5 + $0x10] sm:$0xff]  }
  0x79   : > { %2207 = vmatprep.mubr.msk.bf16.mxu1 %vm851_vm0, %v402_v46  ;;  %2258 = vmatpush3.bf16.msra.mxu0 %v2403_v34 }
  0x7a   : > { %2259 = vmatprep.subr.bf16.mxu0 %v2404_v45 }
  0x7d   : > { %2260 = vmatpush3.bf16.msra.mxu0 %v2404_v45 }
  0x7e   : > { %2261 = vmatprep.subr.bf16.mxu0 %v2405_v52 }
  0x7f   : > { %1119 = vmatmul.mubr.bf16.gmra.mrb[40].mxu0 %v414_v55 }
  0x80   : > { %2208 = vmatmul.mubr.msk.bf16.vlgmr.msra.gmra.mrb[40].mxu1 %vm851_vm0, %v409_v56  ;;  %1126 = vmatprep.mubr.bf16.mxu0 %v422_v57 }
  0x81   : > { %2211 = vmatprep.mubr.msk.bf16.mxu1 %vm851_vm0, %v416_v58  ;;  %2224 = vmatpush3.bf16.msra.mxu1 %v2394_v25 }
  0x82   : > { %2225 = vmatprep.subr.bf16.mxu1 %v2395_v26  ;;  %2262 = vmatpush3.bf16.msra.mxu0 %v2405_v52 }
  0x83   : > { %2263 = vmatprep.subr.bf16.mxu0 %v2406_v63 }
  0x85   : > { %2226 = vmatpush3.bf16.msra.mxu1 %v2395_v26 }
  0x86   : > { %2227 = vmatprep.subr.bf16.mxu1 %v2396_v27  ;;  %2264 = vmatpush3.bf16.msra.mxu0 %v2406_v63 }
  0x87   : > { %1127 = vmatmul.mubr.bf16.gmra.mrb[44].mxu0 %v421_v3 }
  0x88   : > { %2212 = vmatmul.mubr.msk.bf16.gmra.mrb[44].mxu1 %vm851_vm0, %v423_v4  ;;  %1134 = vmatprep.mubr.bf16.mxu0 %v429_v5 }
  0x89   : > { %2215 = vmatprep.mubr.msk.bf16.mxu1 %vm851_vm0, %v430_v6  ;;  %2228 = vmatpush3.bf16.msra.mxu1 %v2396_v27  ;;  %v2407_v6 = vld [vmem:[%s3031_s5 + $0x28] sm:$0xff]  }
  0x8a   : > { %2229 = vmatprep.subr.bf16.mxu1 %v2397_v28  ;;  %2265 = vmatprep.subr.bf16.mxu0 %v2407_v6 }
  0x8b   : > { %2266 = vmatpush3.bf16.msra.mxu0 %v2407_v6 }
  0x8d   : > { %2230 = vmatpush3.bf16.msra.mxu1 %v2397_v28 }
  0x8e   : > { %2231 = vmatprep.subr.bf16.mxu1 %v2398_v29 }
  0x8f   : > { %1135 = vmatmul.mubr.bf16.gmra.mrb[48].mxu0 %v428_v15 }
  0x90   : > { %2216 = vmatmul.mubr.msk.bf16.gmra.mrb[48].mxu1 %vm851_vm0, %v437_v16  ;;  %1142 = vmatprep.mubr.bf16.mxu0 %v436_v17 }
  0x91   : > { %2219 = vmatprep.mubr.msk.bf16.mxu1 %vm851_vm0, %v444_v18  ;;  %2232 = vmatpush3.bf16.msra.mxu1 %v2398_v29 }
  0x92   : > { %2233 = vmatprep.subr.bf16.mxu1 %v2399_v30 }
  0x95   : > { %2234 = vmatpush3.bf16.msra.mxu1 %v2399_v30 }
  0x96   : > { %2235 = vmatprep.subr.bf16.mxu1 %v2400_v31 }
  0x97   : > { %1143 = vmatmul.mubr.bf16.gmra.mrb[52].mxu0 %v435_v23 }
  0x98   : > { %2220 = vmatmul.mubr.msk.bf16.gmra.mrb[52].mxu1 %vm851_vm0, %v451_v24 }
  0x99   : > { %2236 = vmatpush3.bf16.msra.mxu1 %v2400_v31 }
  0x9a   : > { %2237 = vmatprep.subr.bf16.mxu1 %v2401_v32 }
  0x9d   : > { %2238 = vmatpush3.bf16.msra.mxu1 %v2401_v32 }
 0x102   : > { %v1988_v35 = vpop.f32.mrb[0].mxu0 }
 0x103   : > { %v1989_v37 = vpop.f32.mrb[1].mxu0  ;;  %v2052_v38 = vpop.f32.mrb[0].mxu1 }
 0x104   : > { %v1990_v39 = vadd.f32 %v1989_v37, %v1988_v35  ;;  %v1991_v40 = vpop.f32.mrb[2].mxu0  ;;  %v2053_v41 = vpop.f32.mrb[1].mxu1 }
 0x105   : > { %v1992_v42 = vpop.f32.mrb[3].mxu0  ;;  %v2054_v43 = vadd.f32 %v2053_v41, %v2052_v38  ;;  %v2055_v44 = vpop.f32.mrb[2].mxu1 }
 0x106   : > { %v911_v46 = vadd.f32 %v1990_v39, %v2871_v36  ;;  %v1993_v47 = vadd.f32 %v1992_v42, %v1991_v40  ;;  %v2056_v48 = vpop.f32.mrb[3].mxu1 }
 0x107   : > { %v2057_v49 = vadd.f32 %v2056_v48, %v2055_v44 }
 0x108   : > { %v914_v50 = vadd.f32 %v1993_v47, %v2871_v36  ;;  %v2878_v51 = vadd.f32 %v2054_v43, %v911_v46 }
 0x10a   : > { %v2883_v53 = vadd.f32 %v2057_v49, %v914_v50  ;;  %v1994_v54 = vpop.f32.mrb[4].mxu0 }
 0x10b   : > { %v1995_v55 = vpop.f32.mrb[5].mxu0  ;;  %v2058_v56 = vpop.f32.mrb[4].mxu1 }
 0x10c   : > { %v1996_v57 = vadd.f32 %v1995_v55, %v1994_v54  ;;  %v1997_v58 = vpop.f32.mrb[6].mxu0  ;;  %v2059_v59 = vpop.f32.mrb[5].mxu1 }
 0x10d   : > { %v1998_v60 = vpop.f32.mrb[7].mxu0  ;;  %v2060_v61 = vadd.f32 %v2059_v59, %v2058_v56  ;;  %v2061_v62 = vpop.f32.mrb[6].mxu1 }
 0x10e   : > { %v919_v0 = vadd.f32 %v1996_v57, %v2871_v36  ;;  %v1999_v1 = vadd.f32 %v1998_v60, %v1997_v58  ;;  %v2062_v2 = vpop.f32.mrb[7].mxu1 }
 0x10f   : > { %v2063_v3 = vadd.f32 %v2062_v2, %v2061_v62 }
 0x110   : > { %v922_v4 = vadd.f32 %v1999_v1, %v2871_v36  ;;  %v2890_v5 = vadd.f32 %v2060_v61, %v919_v0 }
 0x112   : > { %v2895_v7 = vadd.f32 %v2063_v3, %v922_v4  ;;  %v2000_v8 = vpop.f32.mrb[8].mxu0 }
 0x113   : > { %v2001_v9 = vpop.f32.mrb[9].mxu0  ;;  %v2064_v10 = vpop.f32.mrb[8].mxu1 }
 0x114   : > { %v2002_v11 = vadd.f32 %v2001_v9, %v2000_v8  ;;  %v2003_v12 = vpop.f32.mrb[10].mxu0  ;;  %v2065_v13 = vpop.f32.mrb[9].mxu1 }
 0x115   : > { %v2004_v14 = vpop.f32.mrb[11].mxu0  ;;  %v2066_v15 = vadd.f32 %v2065_v13, %v2064_v10  ;;  %v2067_v16 = vpop.f32.mrb[10].mxu1 }
 0x116   : > { %v927_v17 = vadd.f32 %v2002_v11, %v2871_v36  ;;  %v2005_v18 = vadd.f32 %v2004_v14, %v2003_v12  ;;  %v2068_v19 = vpop.f32.mrb[11].mxu1 }
 0x117   : > { %v2069_v20 = vadd.f32 %v2068_v19, %v2067_v16 }
 0x118   : > { %v930_v21 = vadd.f32 %v2005_v18, %v2871_v36  ;;  %v2899_v22 = vadd.f32 %v2066_v15, %v927_v17 }
 0x11a   : > { %v2901_v23 = vadd.f32 %v2069_v20, %v930_v21  ;;  %v2006_v24 = vpop.f32.mrb[12].mxu0 }
 0x11b   : > { %v2007_v25 = vpop.f32.mrb[13].mxu0  ;;  %v2070_v26 = vpop.f32.mrb[12].mxu1 }
 0x11c   : > { %v2008_v27 = vadd.f32 %v2007_v25, %v2006_v24  ;;  %v2009_v28 = vpop.f32.mrb[14].mxu0  ;;  %v2071_v29 = vpop.f32.mrb[13].mxu1 }
 0x11d   : > { %v2010_v30 = vpop.f32.mrb[15].mxu0  ;;  %v2072_v31 = vadd.f32 %v2071_v29, %v2070_v26  ;;  %v2073_v32 = vpop.f32.mrb[14].mxu1 }
 0x11e   : > { %v935_v33 = vadd.f32 %v2008_v27, %v2871_v36  ;;  %v2011_v34 = vadd.f32 %v2010_v30, %v2009_v28  ;;  %v2074_v35 = vpop.f32.mrb[15].mxu1 }
 0x11f   : > { %v2075_v37 = vadd.f32 %v2074_v35, %v2073_v32 }
 0x120   : > { %v938_v38 = vadd.f32 %v2011_v34, %v2871_v36  ;;  %v2905_v39 = vadd.f32 %v2072_v31, %v935_v33 }
 0x122   : > { %v2907_v40 = vadd.f32 %v2075_v37, %v938_v38  ;;  %v2012_v41 = vpop.f32.mrb[16].mxu0 }
 0x123   : > { %v2013_v42 = vpop.f32.mrb[17].mxu0  ;;  %v2076_v43 = vpop.f32.mrb[16].mxu1 }
 0x124   : > { %v2014_v44 = vadd.f32 %v2013_v42, %v2012_v41  ;;  %v2015_v45 = vpop.f32.mrb[18].mxu0  ;;  %v2077_v46 = vpop.f32.mrb[17].mxu1 }
 0x125   : > { %v2016_v47 = vpop.f32.mrb[19].mxu0  ;;  %v2078_v48 = vadd.f32 %v2077_v46, %v2076_v43  ;;  %v2079_v49 = vpop.f32.mrb[18].mxu1 }
 0x126   : > { %v943_v50 = vadd.f32 %v2014_v44, %v2871_v36  ;;  %v2017_v52 = vadd.f32 %v2016_v47, %v2015_v45  ;;  %v2080_v54 = vpop.f32.mrb[19].mxu1 }
 0x127   : > { %v2081_v55 = vadd.f32 %v2080_v54, %v2079_v49 }
 0x128   : > { %v946_v56 = vadd.f32 %v2017_v52, %v2871_v36  ;;  %v2911_v57 = vadd.f32 %v2078_v48, %v943_v50 }
 0x12a   : > { %v2913_v58 = vadd.f32 %v2081_v55, %v946_v56  ;;  %v2018_v59 = vpop.f32.mrb[20].mxu0 }
 0x12b   : > { %v2019_v60 = vpop.f32.mrb[21].mxu0  ;;  %v2082_v61 = vpop.f32.mrb[20].mxu1 }
 0x12c   : > { %v2020_v62 = vadd.f32 %v2019_v60, %v2018_v59  ;;  %v2021_v63 = vpop.f32.mrb[22].mxu0  ;;  %v2083_v0 = vpop.f32.mrb[21].mxu1 }
 0x12d   : > { %v2022_v1 = vpop.f32.mrb[23].mxu0  ;;  %v2084_v2 = vadd.f32 %v2083_v0, %v2082_v61  ;;  %v2085_v3 = vpop.f32.mrb[22].mxu1 }
 0x12e   : > { %v951_v4 = vadd.f32 %v2020_v62, %v2871_v36  ;;  %v2023_v6 = vadd.f32 %v2022_v1, %v2021_v63  ;;  %v2086_v8 = vpop.f32.mrb[23].mxu1 }
 0x12f   : > { %v2087_v9 = vadd.f32 %v2086_v8, %v2085_v3 }
 0x130   : > { %v954_v10 = vadd.f32 %v2023_v6, %v2871_v36  ;;  %v2917_v11 = vadd.f32 %v2084_v2, %v951_v4 }
 0x132   : > { %v2919_v12 = vadd.f32 %v2087_v9, %v954_v10  ;;  %v2024_v13 = vpop.f32.mrb[24].mxu0 }
 0x133   : > { %v2025_v14 = vpop.f32.mrb[25].mxu0  ;;  %v2088_v15 = vpop.f32.mrb[24].mxu1 }
 0x134   : > { %v2026_v16 = vadd.f32 %v2025_v14, %v2024_v13  ;;  %v2027_v17 = vpop.f32.mrb[26].mxu0  ;;  %v2089_v18 = vpop.f32.mrb[25].mxu1 }
 0x135   : > { %v2028_v19 = vpop.f32.mrb[27].mxu0  ;;  %v2090_v20 = vadd.f32 %v2089_v18, %v2088_v15  ;;  %v2091_v21 = vpop.f32.mrb[26].mxu1 }
 0x136   : > { %v959_v24 = vadd.f32 %v2026_v16, %v2871_v36  ;;  %v2029_v25 = vadd.f32 %v2028_v19, %v2027_v17  ;;  %v2092_v26 = vpop.f32.mrb[27].mxu1 }
 0x137   : > { %v2093_v27 = vadd.f32 %v2092_v26, %v2091_v21 }
 0x138   : > { %v962_v28 = vadd.f32 %v2029_v25, %v2871_v36  ;;  %v1056_v29 = vadd.f32 %v2090_v20, %v959_v24 }
 0x13a   : > { %v1059_v30 = vadd.f32 %v2093_v27, %v962_v28  ;;  %v2030_v31 = vpop.f32.mrb[28].mxu0 }
 0x13b   : > { %v2031_v32 = vpop.f32.mrb[29].mxu0  ;;  %v2094_v33 = vpop.f32.mrb[28].mxu1 }
 0x13c   : > { %v2032_v34 = vadd.f32 %v2031_v32, %v2030_v31  ;;  %v2033_v35 = vpop.f32.mrb[30].mxu0  ;;  %v2095_v37 = vpop.f32.mrb[29].mxu1 }
 0x13d   : > { %v2034_v38 = vpop.f32.mrb[31].mxu0  ;;  %v2096_v41 = vadd.f32 %v2095_v37, %v2094_v33  ;;  %v2097_v42 = vpop.f32.mrb[30].mxu1 }
 0x13e   : > { %v967_v43 = vadd.f32 %v2032_v34, %v2871_v36  ;;  %v2035_v44 = vadd.f32 %v2034_v38, %v2033_v35  ;;  %v2098_v45 = vpop.f32.mrb[31].mxu1 }
 0x13f   : > { %v2099_v46 = vadd.f32 %v2098_v45, %v2097_v42 }
 0x140   : > { %v970_v47 = vadd.f32 %v2035_v44, %v2871_v36  ;;  %v1064_v48 = vadd.f32 %v2096_v41, %v967_v43 }
 0x142   : > { %v1067_v49 = vadd.f32 %v2099_v46, %v970_v47  ;;  %v2116_v50 = vpop.f32.mrb[32].mxu0 }
 0x143   : > { %v2152_v52 = vpop.f32.mrb[32].mxu1  ;;  %v2117_v54 = vpop.f32.mrb[33].mxu0 }
 0x144   : > { %v2118_v55 = vadd.f32 %v2117_v54, %v2116_v50  ;;  %v2153_v56 = vpop.f32.mrb[33].mxu1  ;;  %v2119_v59 = vpop.f32.mrb[34].mxu0 }
 0x145   : > { %v2154_v60 = vadd.f32 %v2153_v56, %v2152_v52  ;;  %v2155_v61 = vpop.f32.mrb[34].mxu1  ;;  %v2120_v62 = vpop.f32.mrb[35].mxu0 }
 0x146   : > { %v2121_v63 = vadd.f32 %v2120_v62, %v2119_v59  ;;  %v2156_v0 = vpop.f32.mrb[35].mxu1  ;;  %v1105_v1 = vadd.f32 %v2118_v55, %v2878_v51 }
 0x147   : > { %v2157_v2 = vadd.f32 %v2156_v0, %v2155_v61  ;;  %v2926_v3 = vadd.f32 %v2154_v60, %v1056_v29 }
 0x148   : > { %v1108_v36 = vadd.f32 %v2121_v63, %v2883_v53 }
 0x149   : > { %v2929_v4 = vadd.f32 %v2157_v2, %v1059_v30 }
 0x14a   : > { %v2122_v6 = vpop.f32.mrb[36].mxu0 }
 0x14b   : > { %v2158_v8 = vpop.f32.mrb[36].mxu1  ;;  %v2123_v9 = vpop.f32.mrb[37].mxu0 }
 0x14c   : > { %v2124_v10 = vadd.f32 %v2123_v9, %v2122_v6  ;;  %v2159_v13 = vpop.f32.mrb[37].mxu1  ;;  %v2125_v14 = vpop.f32.mrb[38].mxu0 }
 0x14d   : > { %v2160_v15 = vadd.f32 %v2159_v13, %v2158_v8  ;;  %v2161_v16 = vpop.f32.mrb[38].mxu1  ;;  %v2126_v17 = vpop.f32.mrb[39].mxu0 }
 0x14e   : > { %v2127_v18 = vadd.f32 %v2126_v17, %v2125_v14  ;;  %v2162_v19 = vpop.f32.mrb[39].mxu1  ;;  %v1113_v51 = vadd.f32 %v2124_v10, %v2890_v5 }
 0x14f   : > { %v2163_v20 = vadd.f32 %v2162_v19, %v2161_v16  ;;  %v2932_v21 = vadd.f32 %v2160_v15, %v1064_v48 }
 0x150   : > { %v1116_v53 = vadd.f32 %v2127_v18, %v2895_v7 }
 0x151   : > { %v2935_v24 = vadd.f32 %v2163_v20, %v1067_v49 }
 0x152   : > { %v2128_v25 = vpop.f32.mrb[40].mxu0 }
 0x153   : > { %v2209_v26 = vpop.f32.mrb[40].mxu1  ;;  %v2129_v27 = vpop.f32.mrb[41].mxu0 }
 0x154   : > { %v1210_v28 = vadd.f32 %v2209_v26, %v1113_v51  ;;  %v2130_v29 = vadd.f32 %v2129_v27, %v2128_v25  ;;  %v1201_v30 = vpop.f32.mrb[41].mxu1  ;;  %v2131_v31 = vpop.f32.mrb[42].mxu0 }
 0x155   : > { %v1202_v32 = vadd.f32 %v1201_v30, %v1105_v1  ;;  %v2210_v33 = vpop.f32.mrb[42].mxu1  ;;  %v2132_v34 = vpop.f32.mrb[43].mxu0 }
 0x156   : > { %v1213_v35 = vadd.f32 %v2210_v33, %v1116_v53  ;;  %v2133_v37 = vadd.f32 %v2132_v34, %v2131_v31  ;;  %v1204_v5 = vpop.f32.mrb[43].mxu1  ;;  %v1121_v38 = vadd.f32 %v2130_v29, %v2899_v22  ;;  %v1266_v42 = vmax.f32 %v1210_v28, 0.0 }
 0x157   : > { %v1205_v41 = vadd.f32 %v1204_v5, %v1108_v36  ;;  %v1264_v44 = vmax.f32 %v1202_v32, 0.0 }
 0x158   : > { %v1267_v7 = vmax.f32 %v1213_v35, 0.0  ;;  %v1124_v43 = vadd.f32 %v2133_v37, %v2901_v23 }
 0x159   : > { %v1265_v45 = vmax.f32 %v1205_v41, 0.0 }
 0x15a   : > { %v1281_v46 = vpack.c.bf16 %v1267_v7, %v1266_v42  ;;  %v2134_v47 = vpop.f32.mrb[44].mxu0 }
 0x15b   : > { %v1280_v48 = vpack.c.bf16 %v1265_v45, %v1264_v44  ;;  %v2213_v49 = vpop.f32.mrb[44].mxu1  ;;  %v2135_v50 = vpop.f32.mrb[45].mxu0 }
 0x15c   : > { %v2136_v52 = vadd.f32 %v2135_v50, %v2134_v47  ;;  %v1217_v54 = vpop.f32.mrb[45].mxu1  ;;  %v2137_v55 = vpop.f32.mrb[46].mxu0 }
 0x15d   : > { %v1218_v56 = vadd.f32 %v1217_v54, %v1121_v38  ;;  %v2214_v59 = vpop.f32.mrb[46].mxu1  ;;  %2239 = vmatprep.mubr.bf16.mxu1 %v1280_v48  ;;  %v2138_v60 = vpop.f32.mrb[47].mxu0 }
 0x15e   : > { %v1129_v22 = vadd.f32 %v2136_v52, %v2905_v39  ;;  %v2139_v61 = vadd.f32 %v2138_v60, %v2137_v55  ;;  %v1220_v62 = vpop.f32.mrb[47].mxu1  ;;  %2240 = vmatmul.mubr.bf16.vlgmr.msra.gmra.mrb[56].mxu1 %v1281_v46 }
 0x15f   : > { %v1221_v23 = vadd.f32 %v1220_v62, %v1124_v43  ;;  %v1268_v1 = vmax.f32 %v1218_v56, 0.0 }
 0x160   : > { %v1226_v63 = vadd.f32 %v2213_v49, %v1129_v22  ;;  %v1132_v0 = vadd.f32 %v2139_v61, %v2907_v40 }
 0x161   : > { %v1269_v2 = vmax.f32 %v1221_v23, 0.0 }
 0x162   : > { %v1229_v36 = vadd.f32 %v2214_v59, %v1132_v0  ;;  %v2140_v6 = vpop.f32.mrb[48].mxu0  ;;  %v1270_v13 = vmax.f32 %v1226_v63, 0.0 }
 0x163   : > { %v1282_v8 = vpack.c.bf16 %v1269_v2, %v1268_v1  ;;  %v2141_v9 = vpop.f32.mrb[49].mxu0  ;;  %v2217_v10 = vpop.f32.mrb[48].mxu1 }
 0x164   : > { %v1271_v14 = vmax.f32 %v1229_v36, 0.0  ;;  %v2142_v15 = vadd.f32 %v2141_v9, %v2140_v6  ;;  %v2143_v16 = vpop.f32.mrb[50].mxu0  ;;  %v1233_v17 = vpop.f32.mrb[49].mxu1 }
 0x165   : > { %2243 = vmatprep.mubr.bf16.mxu1 %v1282_v8  ;;  %v2144_v39 = vpop.f32.mrb[51].mxu0  ;;  %v2218_v18 = vpop.f32.mrb[50].mxu1 }
 0x166   : > { %v2145_v19 = vadd.f32 %v2144_v39, %v2143_v16  ;;  %v1137_v51 = vadd.f32 %v2142_v15, %v2911_v57  ;;  %v1283_v20 = vpack.c.bf16 %v1271_v14, %v1270_v13  ;;  %v1236_v40 = vpop.f32.mrb[51].mxu1 }
 0x168   : > { %v1234_v53 = vadd.f32 %v1233_v17, %v1137_v51  ;;  %2244 = vmatmul.mubr.bf16.gmra.mrb[60].mxu1 %v1283_v20  ;;  %v1140_v25 = vadd.f32 %v2145_v19, %v2913_v58 }
 0x16a   : > { %v1237_v26 = vadd.f32 %v1236_v40, %v1140_v25  ;;  %v2146_v27 = vpop.f32.mrb[52].mxu0  ;;  %v1272_v30 = vmax.f32 %v1234_v53, 0.0 }
 0x16b   : > { %v2221_v28 = vpop.f32.mrb[52].mxu1  ;;  %v2147_v29 = vpop.f32.mrb[53].mxu0 }
 0x16c   : > { %v1273_v31 = vmax.f32 %v1237_v26, 0.0  ;;  %v1258_v32 = vadd.f32 %v2221_v28, %v2932_v21  ;;  %v2148_v33 = vadd.f32 %v2147_v29, %v2146_v27  ;;  %v1249_v34 = vpop.f32.mrb[53].mxu1  ;;  %v2149_v35 = vpop.f32.mrb[54].mxu0 }
 0x16d   : > { %v1250_v37 = vadd.f32 %v1249_v34, %v2926_v3  ;;  %v2222_v57 = vpop.f32.mrb[54].mxu1  ;;  %v2150_v5 = vpop.f32.mrb[55].mxu0 }
 0x16e   : > { %v1284_v38 = vpack.c.bf16 %v1273_v31, %v1272_v30  ;;  %v1145_v41 = vadd.f32 %v2148_v33, %v2917_v11  ;;  %v1261_v58 = vadd.f32 %v2222_v57, %v2935_v24  ;;  %v1252_v42 = vpop.f32.mrb[55].mxu1  ;;  %v2151_v7 = vadd.f32 %v2150_v5, %v2149_v35  ;;  %v1869_v24 = vld [vmem:[%s3030_s4] ss:$0 sm:$0xff] }
 0x16f   : > { %v1253_v43 = vadd.f32 %v1252_v42, %v2929_v4  ;;  %v1278_v44 = vmax.f32 %v1258_v32, 0.0  ;;  %v1276_v21 = vmax.f32 %v1250_v37, 0.0  ;;  %v2408_v4 = vld [vmem:[%s3031_s5 + $0x30] sm:$0xff]  }
 0x170   : > { %v1242_v45 = vadd.f32 %v2217_v10, %v1145_v41  ;;  %v1279_v46 = vmax.f32 %v1261_v58, 0.0  ;;  %2247 = vmatprep.mubr.bf16.mxu1 %v1284_v38  ;;  %v1148_v47 = vadd.f32 %v2151_v7, %v2919_v12  ;;  %2267 = vmatprep.subr.bf16.mxu0 %v2408_v4  ;;  %v2409_v12 = vld [vmem:[%s3031_s5 + $0x38] sm:$0xff]  }
 0x171   : > { %v1277_v48 = vmax.f32 %v1253_v43, 0.0  ;;  %2268 = vmatpush3.bf16.msra.mxu0 %v2408_v4 }
 0x172   : > { %v1287_v3 = vpack.c.bf16 %v1279_v46, %v1278_v44  ;;  %v1245_v49 = vadd.f32 %v2218_v18, %v1148_v47  ;;  %v1274_v52 = vmax.f32 %v1242_v45, 0.0  ;;  %2269 = vmatprep.subr.bf16.mxu0 %v2409_v12 }
 0x173   : > { %v1286_v50 = vpack.c.bf16 %v1277_v48, %v1276_v21 }
 0x174   : > { %v1275_v54 = vmax.f32 %v1245_v49, 0.0 }
 0x175   : > { %2270 = vmatpush3.bf16.msra.mxu0 %v2409_v12 }
 0x176   : > { %v1285_v11 = vpack.c.bf16 %v1275_v54, %v1274_v52 }
 0x178   : > { %2248 = vmatmul.mubr.bf16.gmra.mrb[64].mxu1 %v1285_v11 }
 0x179   : > { %2251 = vmatprep.mubr.bf16.mxu1 %v1286_v50  ;;  %v1878_v50 = vld [vmem:[%s3032_s6] ss:$0 sm:$0xff] }
 0x180   : > { %2252 = vmatmul.mubr.bf16.gmra.mrb[68].mxu1 %v1287_v3 }
 0x231   : > { %v2241_v55 = vpop.f32.mrb[56].mxu1 }
 0x232   : > { %v1402_v56 = vadd.f32 %v2241_v55, %v1869_v24  ;;  %v1393_v59 = vpop.f32.mrb[57].mxu1 }
 0x233   : > { %v1394_v60 = vadd.f32 %v1869_v24, %v1393_v59  ;;  %v2242_v22 = vpop.f32.mrb[58].mxu1 }
 0x234   : > { %v1405_v61 = vadd.f32 %v2242_v22, %v1869_v24  ;;  %v1396_v62 = vpop.f32.mrb[59].mxu1  ;;  %v1458_v63 = vmax.f32 %v1402_v56, 0.0 }
 0x235   : > { %v1397_v23 = vadd.f32 %v1869_v24, %v1396_v62  ;;  %v1456_v1 = vmax.f32 %v1394_v60, 0.0 }
 0x236   : > { %v1459_v0 = vmax.f32 %v1405_v61, 0.0 }
 0x237   : > { %v1457_v2 = vmax.f32 %v1397_v23, 0.0 }
 0x238   : > { %v1473_v36 = vpack.c.bf16 %v1459_v0, %v1458_v63 }
 0x239   : > { %v1472_v6 = vpack.c.bf16 %v1457_v2, %v1456_v1 }
 0x23b   : > { %2271 = vmatprep.mubr.bf16.mxu0 %v1472_v6  ;;  %v2245_v8 = vpop.f32.mrb[60].mxu1 }
 0x23c   : > { %v1418_v9 = vadd.f32 %v2245_v8, %v1869_v24  ;;  %2272 = vmatmul.mubr.bf16.vlgmr.msra.gmra.mrb[56].mxu0 %v1473_v36  ;;  %v1409_v10 = vpop.f32.mrb[61].mxu1 }
 0x23d   : > { %v1410_v13 = vadd.f32 %v1869_v24, %v1409_v10  ;;  %v2246_v14 = vpop.f32.mrb[62].mxu1 }
 0x23e   : > { %v1421_v15 = vadd.f32 %v2246_v14, %v1869_v24  ;;  %v1412_v16 = vpop.f32.mrb[63].mxu1  ;;  %v1462_v39 = vmax.f32 %v1418_v9, 0.0 }
 0x23f   : > { %v1413_v17 = vadd.f32 %v1869_v24, %v1412_v16  ;;  %v1460_v19 = vmax.f32 %v1410_v13, 0.0 }
 0x240   : > { %v1463_v18 = vmax.f32 %v1421_v15, 0.0 }
 0x241   : > { %v1461_v51 = vmax.f32 %v1413_v17, 0.0 }
 0x242   : > { %v1475_v20 = vpack.c.bf16 %v1463_v18, %v1462_v39 }
 0x243   : > { %v1474_v40 = vpack.c.bf16 %v1461_v51, %v1460_v19 }
 0x245   : > { %2275 = vmatprep.mubr.bf16.mxu0 %v1474_v40 }
 0x246   : > { %2276 = vmatmul.mubr.bf16.gmra.mrb[60].mxu0 %v1475_v20 }
 0x24b   : > { %v2249_v53 = vpop.f32.mrb[64].mxu1 }
 0x24c   : > { %v1434_v25 = vadd.f32 %v2249_v53, %v1869_v24  ;;  %v1425_v26 = vpop.f32.mrb[65].mxu1 }
 0x24d   : > { %v1426_v27 = vadd.f32 %v1869_v24, %v1425_v26  ;;  %v2250_v28 = vpop.f32.mrb[66].mxu1 }
 0x24e   : > { %v1437_v29 = vadd.f32 %v2250_v28, %v1869_v24  ;;  %v1428_v30 = vpop.f32.mrb[67].mxu1  ;;  %v1466_v32 = vmax.f32 %v1434_v25, 0.0 }
 0x24f   : > { %v1429_v31 = vadd.f32 %v1869_v24, %v1428_v30  ;;  %v1464_v34 = vmax.f32 %v1426_v27, 0.0 }
 0x250   : > { %v1467_v33 = vmax.f32 %v1437_v29, 0.0 }
 0x251   : > { %v1465_v35 = vmax.f32 %v1429_v31, 0.0 }
 0x252   : > { %v1477_v37 = vpack.c.bf16 %v1467_v33, %v1466_v32 }
 0x253   : > { %v1476_v57 = vpack.c.bf16 %v1465_v35, %v1464_v34  ;;  %v2253_v5 = vpop.f32.mrb[68].mxu1 }
 0x254   : > { %v1450_v38 = vadd.f32 %v2253_v5, %v1869_v24  ;;  %v1441_v41 = vpop.f32.mrb[69].mxu1 }
 0x255   : > { %v1442_v58 = vadd.f32 %v1869_v24, %v1441_v41  ;;  %v2254_v42 = vpop.f32.mrb[70].mxu1  ;;  %2279 = vmatprep.mubr.bf16.mxu0 %v1476_v57 }
 0x256   : > { %v1453_v7 = vadd.f32 %v2254_v42, %v1869_v24  ;;  %v1444_v43 = vpop.f32.mrb[71].mxu1  ;;  %2280 = vmatmul.mubr.bf16.gmra.mrb[64].mxu0 %v1477_v37  ;;  %v1470_v45 = vmax.f32 %v1450_v38, 0.0 }
 0x257   : > { %v1445_v44 = vadd.f32 %v1869_v24, %v1444_v43  ;;  %v1468_v21 = vmax.f32 %v1442_v58, 0.0 }
 0x258   : > { %v1471_v46 = vmax.f32 %v1453_v7, 0.0 }
 0x259   : > { %v1469_v47 = vmax.f32 %v1445_v44, 0.0 }
 0x25a   : > { %v1479_v48 = vpack.c.bf16 %v1471_v46, %v1470_v45 }
 0x25b   : > { %v1478_v3 = vpack.c.bf16 %v1469_v47, %v1468_v21 }
 0x25d   : > { %2283 = vmatprep.mubr.bf16.mxu0 %v1478_v3 }
 0x25e   : > { %2284 = vmatmul.mubr.bf16.gmra.mrb[68].mxu0 %v1479_v48 }
 0x30f   : > { %v2273_v49 = vpop.f32.mrb[56].mxu0 }
 0x310   : > { %v1585_v52 = vpop.f32.mrb[57].mxu0  ;;  %v1594_v11 = vadd.f32 %v2273_v49, %v1878_v50 }
 0x311   : > { %v2274_v54 = vpop.f32.mrb[58].mxu0  ;;  %v1586_v24 = vadd.f32 %v1878_v50, %v1585_v52 }
 0x312   : > { %v1597_v4 = vadd.f32 %v2274_v54, %v1878_v50  ;;  %v1588_v12 = vpop.f32.mrb[59].mxu0 }
 0x313   : > { %v1589_v55 = vadd.f32 %v1878_v50, %v1588_v12 }
 0x314   : > { %v1933_v56 = vpack.c.bf16 %v1597_v4, %v1594_v11 }
 0x315   : > { %v1928_v59 = vpack.c.bf16 %v1589_v55, %v1586_v24 }
 0x316   : > { %1965 = vst [vmem:[%s2964_s20 + $0x8] sm:$0xff] %v1933_v56  }
 0x317   : > { %1929 = vst [vmem:[%s2964_s20] sm:$0xff] %v1928_v59  }
 0x319   : > { %v2277_v60 = vpop.f32.mrb[60].mxu0 }
 0x31a   : > { %v1601_v22 = vpop.f32.mrb[61].mxu0  ;;  %v1610_v62 = vadd.f32 %v2277_v60, %v1878_v50 }
 0x31b   : > { %v2278_v61 = vpop.f32.mrb[62].mxu0  ;;  %v1602_v0 = vadd.f32 %v1878_v50, %v1601_v22 }
 0x31c   : > { %v1613_v23 = vadd.f32 %v2278_v61, %v1878_v50  ;;  %v1604_v63 = vpop.f32.mrb[63].mxu0 }
 0x31d   : > { %v1605_v1 = vadd.f32 %v1878_v50, %v1604_v63 }
 0x31e   : > { %v1943_v2 = vpack.c.bf16 %v1613_v23, %v1610_v62 }
 0x31f   : > { %v1938_v36 = vpack.c.bf16 %v1605_v1, %v1602_v0 }
 0x320   : > { %1967 = vst [vmem:[%s2964_s20 + $0x18] sm:$0xff] %v1943_v2  }
 0x321   : > { %1966 = vst [vmem:[%s2964_s20 + $0x10] sm:$0xff] %v1938_v36  }
 0x329   : > { %v2281_v6 = vpop.f32.mrb[64].mxu0 }
 0x32a   : > { %v1617_v8 = vpop.f32.mrb[65].mxu0  ;;  %v1626_v10 = vadd.f32 %v2281_v6, %v1878_v50 }
 0x32b   : > { %v2282_v9 = vpop.f32.mrb[66].mxu0  ;;  %v1618_v15 = vadd.f32 %v1878_v50, %v1617_v8 }
 0x32c   : > { %v1629_v13 = vadd.f32 %v2282_v9, %v1878_v50  ;;  %v1620_v14 = vpop.f32.mrb[67].mxu0 }
 0x32d   : > { %v1621_v16 = vadd.f32 %v1878_v50, %v1620_v14 }
 0x32e   : > { %v1953_v17 = vpack.c.bf16 %v1629_v13, %v1626_v10 }
 0x32f   : > { %v1948_v39 = vpack.c.bf16 %v1621_v16, %v1618_v15 }
 0x330   : > { %1969 = vst [vmem:[%s2964_s20 + $0x28] sm:$0xff] %v1953_v17  }
 0x331   : > { %1968 = vst [vmem:[%s2964_s20 + $0x20] sm:$0xff] %v1948_v39   ;;  %v2285_v18 = vpop.f32.mrb[68].mxu0 }
 0x332   : > { %v1633_v19 = vpop.f32.mrb[69].mxu0  ;;  %v1642_v20 = vadd.f32 %v2285_v18, %v1878_v50 }
 0x333   : > { %v2286_v51 = vpop.f32.mrb[70].mxu0  ;;  %v1634_v25 = vadd.f32 %v1878_v50, %v1633_v19 }
 0x334   : > { %v1645_v40 = vadd.f32 %v2286_v51, %v1878_v50  ;;  %v1636_v53 = vpop.f32.mrb[71].mxu0 }
 0x335   : > { %v1637_v26 = vadd.f32 %v1878_v50, %v1636_v53 }
 0x336   : > { %v1963_v27 = vpack.c.bf16 %v1645_v40, %v1642_v20 }
 0x337   : > { %v1958_v28 = vpack.c.bf16 %v1637_v26, %v1634_v25 }
 0x338   : > { %1971 = vst [vmem:[%s2964_s20 + $0x38] sm:$0xff] %v1963_v27  }
 0x339   : > { %1970 = vst [vmem:[%s2964_s20 + $0x30] sm:$0xff] %v1958_v28  }
 0x33a   : > { %2423 = shalt.err (!%p2420_p3)
}
 0x33b   : > { %s2424_s16 = scalar_lea.hbm %s2977_s9, 1024  ;;  %s2428_s19 = scalar_lea.hbm %s3033_s7, 2048 }
 0x33c   : > { %p2425_p4 = scmp.ne.s32.totalorder %s2977_s9, %s2424_s16  ;;  %p2429_p9 = scmp.lt.u32.totalorder %s2977_s9, %s3033_s7 }
 0x33d   : > { %p2430_p10 = scmp.lt.u32.totalorder %s2428_s19, %s2424_s16  ;;  %p2432_p12 = scmp.lt.u32.totalorder %s2424_s16, %s2977_s9 }
 0x33e   : > { %p2426_p7 = pnand %p2425_p4, %p2555_p5 }
 0x33f   : > { %p2431_p11 = por %p2430_p10, %p2429_p9 }
 0x340   : > { %p2427_p8 = pneg %p2426_p7 }
 0x341   : > { %p2433_p13 = por %p2432_p12, %p2431_p11 }
 0x343   : > { %p2434_p0 = pnand %p2433_p13, %p2427_p8 }
 0x345   : > { %2437 = shalt.err (!%p2434_p0)
}
 0x346   : > { %s2475_s23 = smov 64   ;;  %s2476_s29 = smov 4  }
 0x347   : > { %2304 = dma.vmem_to_hbm [thread:$0]  (%p2555_p5), %s2979_s21, 1024, %s2977_s9, %s2985_s28, %s2475_s23, %s2475_s23, %s2476_s29  }
 0x348 PF: > { %p2310_p1 = scmp.ge.s32.totalorder %s2472_s27, 2  ;;  %s1757_s13 = sand.u32 1, %s2460_s24  }
 0x349   : > { %s1758_s8 = scalar_lea.sflag [#allocation3], %s1757_s13 }
 0x34a   : > { %p2307_p2 = pnand %p2310_p1, %p2559_p6 }
 0x34c   : > { %2455 = dma.done.wait (!%p2307_p2), %s1758_s8, 1024  }
 0x34d   : > { %2457 = vsyncadd (!%p2307_p2), %s1758_s8, 4294966272  ;;  %p17_p3 = scmp.ge.s32.totalorder %s2542_s30, 4   ;;  %s3036_s24 = smov %s2464_s25 }
 0x34e   : > { %s3037_s25 = smov %s2468_s26  ;;  %s3038_s26 = smov %s2553_s10 }
 0x34f   : > { %s3039_s27 = smov %s2542_s30  ;;  %19 = sbr.rel (!%p17_p3) target bundleno = 3 (0x3), region = 83 }
 0x356   :  { %1763 = vsyncpa [#allocation3], 1 }
 0x357   :  { %1765 = vsyncpa [#allocation3 + $0x1], 1 }

</bundles_post_ra>
